<compile_context>
chip_gen: v7x
topology: tpu7x:2x2x1
jax: 0.10.0
libtpu: 0.0.40
codegen_flags: <defaults>
</compile_context>

<pallas_src>
import jax
import jax.numpy as jnp
from jax import lax
from jax.experimental import pallas as pl
from jax.experimental.pallas import tpu as pltpu


def _value_head_kernel(x_ref, w_ref, b_ref, o_ref):
    # x_ref: (TM, H)   w_ref: (L, H)   b_ref: (L, 1)   o_ref: (L, TM)
    y = lax.dot_general(
        w_ref[...], x_ref[...],
        dimension_numbers=(((1,), (1,)), ((), ())),   # contract H on both: W @ X^T
        preferred_element_type=jnp.float32,           # f32 accumulation on the MXU
    )                                                 # (L, TM)
    y = y + b_ref[...]                                # f32 bias broadcast over row tile
    o_ref[...] = jnp.tanh(y).astype(o_ref.dtype)


def _row_axis_semantics():
    # Row tiles are independent. On v7x (2 TensorCores per chip) request a
    # guaranteed 2-way core split of the M axis; on single-TC v5e/v6e plain
    # "parallel" is sufficient.
    try:
        kind = jax.devices()[0].device_kind.lower()
    except Exception:  # pragma: no cover - defensive
        kind = ""
    if "v7" in kind and hasattr(pltpu, "CORE_PARALLEL"):
        return (pltpu.CORE_PARALLEL,)
    return ("parallel",)


def value_head_forward(hidden_states, weight, bias, *, target_block_bytes=2 << 20):
    """hidden_states: (B, S, H)
       weight:        (L, H)    (PyTorch nn.Linear layout, used as-is)
       bias:          (L,)
       returns:       (B, S, L) in hidden_states.dtype
    """
    B, S, H = hidden_states.shape
    L = weight.shape[0]
    M = B * S

    x_dtype = hidden_states.dtype
    out_dtype = hidden_states.dtype
    itemsize = jnp.dtype(x_dtype).itemsize
    out_itemsize = jnp.dtype(out_dtype).itemsize

    x2d = hidden_states.reshape(M, H)                 # no pad, no dtype cast
    w = weight.astype(x_dtype)                        # (L, H) native layout (tiny)
    b = bias.reshape(L, 1).astype(jnp.float32)        # (L, 1), kept in f32

    # Row tile: ~target_block_bytes of X per grid step, multiple of 128 (keeps
    # the lane-dense (L, tm) output block legal and the X sublane tiling
    # aligned), capped so the double-buffered X footprint stays small even on
    # v7x's 64 MiB per-core VMEM.
    tm = max(128, (target_block_bytes // (H * itemsize)) // 128 * 128)
    tm = min(tm, 2048)
    if tm >= M:
        tm = M                                        # single block == full dim
    grid = (pl.cdiv(M, tm),)

    # Explicit scoped-VMEM limit (v5e default is only 16 MiB); generous but
    # well under v7x's 64 MiB physical per-core VMEM.
    vmem_needed = (2 * tm * H + 2 * L * H) * itemsize + 2 * L * tm * out_itemsize + L * 4
    vmem_limit = int(min(max(2 * vmem_needed + (8 << 20), 32 << 20), 64 << 20))

    cost = pl.CostEstimate(
        flops=2 * M * H * L,
        transcendentals=M * L,
        bytes_accessed=(M * H * itemsize + H * L * itemsize + M * L * out_itemsize),
    )

    out_lt = pl.pallas_call(
        _value_head_kernel,
        out_shape=jax.ShapeDtypeStruct((L, M), out_dtype),
        grid=grid,
        in_specs=[
            pl.BlockSpec((tm, H), lambda i: (i, 0)),   # X: tiled over rows (pipelined)
            pl.BlockSpec((L, H), lambda i: (0, 0)),    # W: resident across steps
            pl.BlockSpec((L, 1), lambda i: (0, 0)),    # bias: resident across steps
        ],
        out_specs=pl.BlockSpec((L, tm), lambda i: (0, i)),   # lane-dense output tile
        compiler_params=pltpu.CompilerParams(
            dimension_semantics=_row_axis_semantics(),
            vmem_limit_bytes=vmem_limit,
        ),
        cost_estimate=cost,
    )(x2d, w, b)

    # (L, M) -> (M, L) -> (B, S, L); L << H so this is negligible traffic.
    return out_lt.T.reshape(B, S, L)


def _reference(hidden_states, weight, bias):
    y = jnp.einsum("bsh,lh->bsl", hidden_states, weight) + bias
    return jnp.tanh(y)


if __name__ == "__main__":
    # Small config consistent with the module: hidden_size=32, num_labels=1.
    batch, seq, hidden, num_labels = 2, 8, 32, 1

    key = jax.random.PRNGKey(0)
    k_x, k_w, k_b = jax.random.split(key, 3)

    hidden_states = jax.random.normal(k_x, (batch, seq, hidden), jnp.float32)
    # PyTorch Linear shapes: weight (num_labels, hidden), bias (num_labels,)
    weight = jax.random.normal(k_w, (num_labels, hidden), jnp.float32) * 0.1
    bias = jax.random.normal(k_b, (num_labels,), jnp.float32) * 0.1

    out = value_head_forward(hidden_states, weight, bias)
    out = jax.block_until_ready(out)

    ref = _reference(hidden_states, weight, bias)
    assert out.shape == (batch, seq, num_labels)
    assert jnp.allclose(out, ref, atol=1e-5, rtol=1e-5)

    print("KERNEL_OK")
</pallas_src>

<mosaic_0001>
module attributes {stable_mosaic.version = 11 : i64} {
  func.func @_value_head_kernel(%arg0: i32, %arg1: memref<16x32xf32, #tpu.memory_space<vmem>>, %arg2: memref<1x32xf32, #tpu.memory_space<vmem>>, %arg3: memref<1x1xf32, #tpu.memory_space<vmem>>, %arg4: memref<1x16xf32, #tpu.memory_space<vmem>>) attributes {dimension_semantics = [#tpu.dimension_semantics<parallel>], iteration_bounds = array<i64: 1>, scalar_prefetch = 0 : i64, scratch_operands = 0 : i64, tpu.core_type = #tpu.core_type<tc>, window_params = [{transform_indices = @transform_0, window_bounds = array<i64: 16, 32>}, {pipeline_mode = #tpu.pipeline_mode<synchronous>, transform_indices = @transform_1, window_bounds = array<i64: 1, 32>}, {pipeline_mode = #tpu.pipeline_mode<synchronous>, transform_indices = @transform_2, window_bounds = array<i64: 1, 1>}, {transform_indices = @transform_3, window_bounds = array<i64: 1, 16>}]} {
    %c0 = arith.constant 0 : index
    %c0_0 = arith.constant 0 : index
    %0 = vector.load %arg2[%c0, %c0_0] : memref<1x32xf32, #tpu.memory_space<vmem>>, vector<1x32xf32>
    %c0_1 = arith.constant 0 : index
    %c0_2 = arith.constant 0 : index
    %1 = vector.load %arg1[%c0_1, %c0_2] : memref<16x32xf32, #tpu.memory_space<vmem>>, vector<16x32xf32>
    %cst = arith.constant dense<0.000000e+00> : vector<1x16xf32>
    %2 = tpu.matmul %0, %1, %cst {dimension_numbers = #tpu.dot_dimension_numbers<[1], [1], [0], [0], [0, 0, 1, 0], [], []>} : vector<1x32xf32>, vector<16x32xf32>, vector<1x16xf32> -> vector<1x16xf32>
    %c0_3 = arith.constant 0 : index
    %c0_4 = arith.constant 0 : index
    %3 = vector.load %arg3[%c0_3, %c0_4] : memref<1x1xf32, #tpu.memory_space<vmem>>, vector<1x1xf32>
    %4 = vector.broadcast %3 : vector<1x1xf32> to vector<1x16xf32>
    %5 = arith.addf %2, %4 : vector<1x16xf32>
    %6 = math.tanh %5 : vector<1x16xf32>
    %c0_5 = arith.constant 0 : index
    %c0_6 = arith.constant 0 : index
    %7 = vector.load %arg4[%c0_5, %c0_6] : memref<1x16xf32, #tpu.memory_space<vmem>>, vector<1x16xf32>
    tpu.vector_store %arg4[%c0_5, %c0_6], %6 {strides = array<i32>} : memref<1x16xf32, #tpu.memory_space<vmem>>, vector<1x16xf32>,
    return
  }
  func.func @transform_0(%arg0: i32) -> (i32, i32) {
    %c0_i32 = arith.constant 0 : i32
    %c0_i32_0 = arith.constant 0 : i32
    return %arg0, %c0_i32 : i32, i32
  }
  func.func @transform_1(%arg0: i32) -> (i32, i32) {
    %c0_i32 = arith.constant 0 : i32
    %c0_i32_0 = arith.constant 0 : i32
    %c0_i32_1 = arith.constant 0 : i32
    return %c0_i32, %c0_i32_0 : i32, i32
  }
  func.func @transform_2(%arg0: i32) -> (i32, i32) {
    %c0_i32 = arith.constant 0 : i32
    %c0_i32_0 = arith.constant 0 : i32
    %c0_i32_1 = arith.constant 0 : i32
    return %c0_i32, %c0_i32_0 : i32, i32
  }
  func.func @transform_3(%arg0: i32) -> (i32, i32) {
    %c0_i32 = arith.constant 0 : i32
    %c0_i32_0 = arith.constant 0 : i32
    return %c0_i32, %arg0 : i32, i32
  }
}

</mosaic_0001>

<bundles_post_ra>
// kernel: tpu_custom_call.1
= control target key start
LH: loop header
LB: loop body
LE: loop exit
PB: predicated region body
PF: predicated region fallthrough
CT: control target
= control target key end

     0   :  { %s276_s0 = inlined_call_operand.hbm [shape: f32[16,32], index: 0, kind: input, shape index: {}]   ;;  %s277_s1 = inlined_call_operand.vmem [shape: f32[1,32], index: 1, kind: input, shape index: {}]   ;;  %s278_s2 = inlined_call_operand.<no memory space> [shape: f32[1,1], index: 2, kind: input, shape index: {}]   ;;  %s279_s3 = inlined_call_operand.hbm [shape: f32[1,16], index: 3, kind: output, shape index: {}]  }
   0x1   :  { %v8_v0 = vstv %s278_s2 }
   0x2   :  { %9 = vst [vmem:[#allocation2] sm:$0x1] %v8_v0 }
   0x3   :  { %10 = vsyncpa [#allocation4], 0 }
   0x4   :  { %11 = vsyncpa [#allocation5], 0  ;;  %s218_s14 = smov [#allocation3]   ;;  %s170_s18 = scalar_lea.hbm %s276_s0, 256 }
   0x5   :  { %s17_s15 = sshll.u32 %s218_s14, 4  ;;  %p171_p0 = scmp.ne.s32.totalorder %s276_s0, %s170_s18  ;;  %s18_s15 = int_to_ptr.vmem [resolvable:$true] %s17_s15 }
   0x6   :  { %p174_p1 = scmp.lt.u32.totalorder %s170_s18, %s276_s0 }
   0x8   :  { %p176_p2 = pnand %p174_p1, %p171_p0 }
   0xa   :  { %179 = shalt.err (!%p176_p2)
}
   0xb   :  { %s180_s2 = scalar_lea.vmem %s18_s15, 256  ;;  %p185_p4 = scmp.lt.s32.totalorder %s18_s15, %s18_s15 }
   0xc   :  { %p181_p3 = scmp.ne.s32.totalorder %s18_s15, %s180_s2  ;;  %p186_p5 = scmp.lt.s32.totalorder %s180_s2, %s180_s2 }
   0xe   :  { %p187_p6 = por %p186_p5, %p185_p4 }
  0x10   :  { %p188_p7 = pnand %p187_p6, %p181_p3 }
  0x12   :  { %191 = shalt.err (!%p188_p7)
}
  0x13   :  { %s219_s23 = smov 128   ;;  %s220_s24 = smov 8  }
  0x14   :  { %23 = dma.hbm_to_vmem [thread:$0]  %s276_s0, 256, %s18_s15, [#allocation4], %s219_s23, %s219_s23, %s220_s24  }
  0x15   :  { %214 = dma.done.wait [#allocation4], 256  }
  0x16   :  { %215 = vsyncadd [#allocation4], 4294967040  ;;  %v221_v1 = vmov 0.0|0.0   ;;  %vm222_vm0 = vmmov 0   ;;  %v223_v2 = vmov 0.0   ;;  %v224_v3 = vmov 0  }
  0x17   :  { %155 = vmatprep.subr.bf16.mxu0 %v221_v1  ;;  %152 = vmatprep.mubr.msk.f32.mxu0 %vm222_vm0, %v223_v2  ;;  %vm44_vm1 = vcmask 261120   ;;  %v32_v4 = vld [vmem:[#allocation3] sm:$0xff]  ;;  %v33_v5 = vld [vmem:[#allocation3 + $0x8] sm:$0xff]  ;;  %v34_v7 = vld [vmem:[#allocation2] sm:$0x1]  ;;  %v40_v9 = vlaneseq  ;;  %s225_s0 = smov [#allocation6]  }
  0x18   :  { %167 = vset.pattern.permute.xlu0 %v224_v3  ;;  %vm157_vm2 = vmpackc.low %vm44_vm1, %vm44_vm1  ;;  %v156_v6 = vpack.c.bf16 %v33_v5, %v32_v4  ;;  %v31_v8 = vld [vmem:[%s277_s1] sm:$0x1]  ;;  %s133_s29 = sshll.u32 %s225_s0, 4  ;;  %vm125_vm3 = vcmask 122880   ;;  %s134_s29 = int_to_ptr.vmem [resolvable:$true] %s133_s29 }
  0x19   :  { %37 = vperm.xlu0 %167, %v34_v7   ;;  %v41_v10 = vshrl.u32 %v40_v9, 7  ;;  %s192_s30 = scalar_lea.vmem %s134_s29, 16  ;;  %s196_s4 = scalar_lea.vmem %s134_s29, 32 }
  0x1a   :  { %158 = vmatpush3.bf16.xpose.msk.msra.mxu0 %vm157_vm2, %v156_v6  ;;  %p193_p8 = scmp.ne.s32.totalorder %s134_s29, %s192_s30  ;;  %p197_p9 = scmp.lt.s32.totalorder %s134_s29, %s134_s29 }
  0x1b   :  { %v42_v11 = vsub.s32 0, %v41_v10  ;;  %p198_p10 = scmp.lt.s32.totalorder %s196_s4, %s192_s30 }
  0x1d   :  { %p199_p11 = por %p198_p10, %p197_p9 }
  0x1f   :  { %p200_p12 = pnand %p199_p11, %p193_p8 }
  0x21   :  { %153 = vmatmul.mubr.msk.f32.vlgmr.msra.gmra.mrb[0].mxu0 %vm44_vm1, %v31_v8 }
  0x98   :  { %v38_v12 = vpop.permute.xlu0 %37 }
  0x99   :  { %v43_v13 = vrot.slane %v38_v12, %v42_v11 }
  0xf4   :  { %v120_v14 = vpop.f32.mrb[0].mxu0 }
  0xf5   :  { %v121_v15 = vadd.f32 %v120_v14, %v43_v13  ;;  %v154_v16 = vpop.f32.mrb[1].mxu0 }
  0xf7   :  { %168 = vtanh.f32 %v121_v15 }
 0x101   :  { %v169_v17 = vpop.eup %168 }
 0x102   :  { %126 = vst.msk [vmem:[#allocation6] sm:$0x1] %vm125_vm3, %v169_v17 }
 0x103   :  { %203 = shalt.err (!%p200_p12)
}
 0x104   :  { %s204_s6 = scalar_lea.hbm %s279_s3, 16 }
 0x105   :  { %p205_p13 = scmp.ne.s32.totalorder %s279_s3, %s204_s6  ;;  %p208_p0 = scmp.lt.u32.totalorder %s204_s6, %s279_s3 }
 0x107   :  { %p210_p1 = pnand %p208_p0, %p205_p13 }
 0x109   :  { %213 = shalt.err (!%p210_p1)
}
 0x10a   :  { %136 = dma.vmem_to_hbm [thread:$0]  %s134_s29, 16, %s279_s3, [#allocation5]  }
 0x10b   :  { %216 = dma.done.wait [#allocation5], 16  }
 0x10c   :  { %217 = vsyncadd [#allocation5], 4294967280 }
 0x10d   :  { %140 = vsyncpa [#allocation4], 1 }
 0x10e   :  { %141 = vsyncpa [#allocation5], 1 }

</bundles_post_ra>
